<compile_context>
chip_gen: v7x
topology: tpu7x:2x2x1
jax: 0.10.0
libtpu: 0.0.40
codegen_flags: <defaults>
</compile_context>

<pallas_src>
import functools

import jax
import jax.numpy as jnp
from jax.experimental import pallas as pl
from jax.experimental.pallas import tpu as pltpu  # noqa: F401  (TPU backend)

LANE = 128      # vreg lane width  (last dim)
SUBLANE = 8     # vreg sublane width (second-to-last dim)


def _round_up(n, m):
    return ((n + m - 1) // m) * m


def logreg_fused_kernel(x_ref, w_ref, b_ref, o_ref):
    # Single MXU matmul with f32 accumulation, one VPU broadcast bias add,
    # one full unmasked lane-dense store.
    acc = jnp.dot(x_ref[...], w_ref[...], preferred_element_type=jnp.float32)
    o_ref[...] = (acc + b_ref[...]).astype(o_ref.dtype)


def prepare_fused_params(w1, b1, w2, b2):
    """Fold the two eval-mode Linears into one affine map (done once, at load time).

    w1: (L, F), b1: (L,), w2: (C, L), b2: (C,)   [PyTorch (out, in) convention]
    Returns lane-padded fused weight (F, Cp), bias (1, Cp), and true n_label C.
    Only valid while both Dropouts are identity (eval mode).
    """
    F = w1.shape[1]
    C = w2.shape[0]
    w_fused = w1.T @ w2.T                      # (F, C)
    b_fused = b1 @ w2.T + b2                   # (C,)
    Cp = _round_up(C, LANE)                    # lane-dense output: pad C -> 128*k
    w_p = jnp.zeros((F, Cp), w_fused.dtype).at[:, :C].set(w_fused)
    b_p = jnp.zeros((1, Cp), b_fused.dtype).at[0, :C].set(b_fused)
    return w_p, b_p, C


@functools.partial(jax.jit, static_argnames=("n_label",))
def model_logreg_forward(x, w_fused_p, b_fused_p, *, n_label):
    """x: (B, F); w_fused_p: (F, Cp); b_fused_p: (1, Cp).  Returns (B, n_label)."""
    B, F = x.shape
    Cp = w_fused_p.shape[1]

    # Sublane-align the batch so the output block is a full, unmasked tile.
    # (Trace-time check: no padding op is emitted when B is already aligned.)
    Bp = _round_up(max(B, 1), SUBLANE)
    if Bp != B:
        x = jnp.zeros((Bp, F), x.dtype).at[:B, :].set(x)

    flops = 2 * Bp * F * Cp
    bytes_accessed = 4 * (Bp * F + F * Cp + Cp + Bp * Cp)

    out_full = pl.pallas_call(
        logreg_fused_kernel,
        out_shape=jax.ShapeDtypeStruct((Bp, Cp), x.dtype),
        grid=(1,),
        in_specs=[
            pl.BlockSpec((Bp, F), lambda i: (0, 0)),
            pl.BlockSpec((F, Cp), lambda i: (0, 0)),
            pl.BlockSpec((1, Cp), lambda i: (0, 0)),
        ],
        out_specs=pl.BlockSpec((Bp, Cp), lambda i: (0, 0)),
        cost_estimate=pl.CostEstimate(
            flops=flops, transcendentals=0, bytes_accessed=bytes_accessed),
    )(x, w_fused_p, b_fused_p)

    # Drop sublane/lane padding.
    return out_full[:B, :n_label]


def reference_forward(x, w1, b1, w2, b2):
    h = x @ w1.T + b1
    return h @ w2.T + b2


if __name__ == "__main__":
    # Shapes implied by the module: x is (batch, n_feature).
    batch, n_feature, latent_dim, n_label = 8, 32, 10, 4

    key = jax.random.PRNGKey(0)
    kx, k1, kb1, k2, kb2 = jax.random.split(key, 5)

    x = jax.random.normal(kx, (batch, n_feature), dtype=jnp.float32)
    # Deterministic parameters in PyTorch nn.Linear layout: (out_features, in_features).
    w1 = jax.random.normal(k1, (latent_dim, n_feature), dtype=jnp.float32) * 0.1
    b1 = jax.random.normal(kb1, (latent_dim,), dtype=jnp.float32) * 0.1
    w2 = jax.random.normal(k2, (n_label, latent_dim), dtype=jnp.float32) * 0.1
    b2 = jax.random.normal(kb2, (n_label,), dtype=jnp.float32) * 0.1

    # One-time parameter preparation (fusion + layout), hoisted out of the forward path.
    w_fused_p, b_fused_p, _ = prepare_fused_params(w1, b1, w2, b2)
    w_fused_p = jax.block_until_ready(w_fused_p)
    b_fused_p = jax.block_until_ready(b_fused_p)

    out = model_logreg_forward(x, w_fused_p, b_fused_p, n_label=n_label)
    out = jax.block_until_ready(out)

    ref = reference_forward(x, w1, b1, w2, b2)
    assert out.shape == (batch, n_label)
    assert jnp.allclose(out, ref, atol=1e-5, rtol=1e-5), "mismatch vs reference"

    print("KERNEL_OK")
</pallas_src>

<mosaic_0001>
module attributes {stable_mosaic.version = 11 : i64} {
  func.func @logreg_fused_kernel(%arg0: i32, %arg1: memref<8x32xf32, #tpu.memory_space<vmem>>, %arg2: memref<32x128xf32, #tpu.memory_space<vmem>>, %arg3: memref<1x128xf32, #tpu.memory_space<vmem>>, %arg4: memref<8x128xf32, #tpu.memory_space<vmem>>) attributes {dimension_semantics = [#tpu.dimension_semantics<arbitrary>], iteration_bounds = array<i64: 1>, scalar_prefetch = 0 : i64, scratch_operands = 0 : i64, tpu.core_type = #tpu.core_type<tc>, window_params = [{pipeline_mode = #tpu.pipeline_mode<synchronous>, transform_indices = @transform_0, window_bounds = array<i64: 8, 32>}, {pipeline_mode = #tpu.pipeline_mode<synchronous>, transform_indices = @transform_1, window_bounds = array<i64: 32, 128>}, {pipeline_mode = #tpu.pipeline_mode<synchronous>, transform_indices = @transform_2, window_bounds = array<i64: 1, 128>}, {pipeline_mode = #tpu.pipeline_mode<synchronous>, transform_indices = @transform_3, window_bounds = array<i64: 8, 128>}]} {
    %c0 = arith.constant 0 : index
    %c0_0 = arith.constant 0 : index
    %0 = vector.load %arg1[%c0, %c0_0] : memref<8x32xf32, #tpu.memory_space<vmem>>, vector<8x32xf32>
    %c0_1 = arith.constant 0 : index
    %c0_2 = arith.constant 0 : index
    %1 = vector.load %arg2[%c0_1, %c0_2] : memref<32x128xf32, #tpu.memory_space<vmem>>, vector<32x128xf32>
    %cst = arith.constant dense<0.000000e+00> : vector<8x128xf32>
    %2 = tpu.matmul %0, %1, %cst {dimension_numbers = #tpu.dot_dimension_numbers<[1], [0], [0], [1], [0, 0, 1, 1], [], []>} : vector<8x32xf32>, vector<32x128xf32>, vector<8x128xf32> -> vector<8x128xf32>
    %c0_3 = arith.constant 0 : index
    %c0_4 = arith.constant 0 : index
    %3 = vector.load %arg3[%c0_3, %c0_4] : memref<1x128xf32, #tpu.memory_space<vmem>>, vector<1x128xf32>
    %4 = vector.broadcast %3 : vector<1x128xf32> to vector<8x128xf32>
    %5 = arith.addf %2, %4 : vector<8x128xf32>
    %c0_5 = arith.constant 0 : index
    %c0_6 = arith.constant 0 : index
    %6 = vector.load %arg4[%c0_5, %c0_6] : memref<8x128xf32, #tpu.memory_space<vmem>>, vector<8x128xf32>
    tpu.vector_store %arg4[%c0_5, %c0_6], %5 {strides = array<i32>} : memref<8x128xf32, #tpu.memory_space<vmem>>, vector<8x128xf32>,
    return
  }
  func.func @transform_0(%arg0: i32) -> (i32, i32) {
    %c0_i32 = arith.constant 0 : i32
    %c0_i32_0 = arith.constant 0 : i32
    %c0_i32_1 = arith.constant 0 : i32
    return %c0_i32, %c0_i32_0 : i32, i32
  }
  func.func @transform_1(%arg0: i32) -> (i32, i32) {
    %c0_i32 = arith.constant 0 : i32
    %c0_i32_0 = arith.constant 0 : i32
    %c0_i32_1 = arith.constant 0 : i32
    return %c0_i32, %c0_i32_0 : i32, i32
  }
  func.func @transform_2(%arg0: i32) -> (i32, i32) {
    %c0_i32 = arith.constant 0 : i32
    %c0_i32_0 = arith.constant 0 : i32
    %c0_i32_1 = arith.constant 0 : i32
    return %c0_i32, %c0_i32_0 : i32, i32
  }
  func.func @transform_3(%arg0: i32) -> (i32, i32) {
    %c0_i32 = arith.constant 0 : i32
    %c0_i32_0 = arith.constant 0 : i32
    %c0_i32_1 = arith.constant 0 : i32
    return %c0_i32, %c0_i32_0 : i32, i32
  }
}

</mosaic_0001>

<bundles_post_ra>
// kernel: model_logreg_forward.1
= control target key start
LH: loop header
LB: loop body
LE: loop exit
PB: predicated region body
PF: predicated region fallthrough
CT: control target
= control target key end

     0   :  { %8 = vsyncpa [#allocation3], 0  ;;  %s276_s0 = inlined_call_operand.hbm [shape: f32[8,32], index: 0, kind: input, shape index: {}]   ;;  %s277_s1 = inlined_call_operand.hbm [shape: f32[32,128], index: 1, kind: input, shape index: {}]   ;;  %s278_s2 = inlined_call_operand.vmem [shape: f32[1,128], index: 2, kind: input, shape index: {}]   ;;  %s279_s3 = inlined_call_operand.vmem [shape: f32[8,128], index: 3, kind: output, shape index: {}]  }
   0x1   :  { %9 = vsyncpa [#allocation5], 0  ;;  %s212_s12 = smov [#allocation2]   ;;  %s213_s14 = smov [#allocation4]  }
   0x2   :  { %s16_s13 = sshll.u32 %s212_s12, 4  ;;  %s25_s15 = sshll.u32 %s213_s14, 4  ;;  %s17_s13 = int_to_ptr.vmem [resolvable:$true] %s16_s13  ;;  %s239_s15 = int_to_ptr.vmem [resolvable:$true] %s25_s15 }
   0x3   :  { %s164_s18 = scalar_lea.hbm %s276_s0, 128 }
   0x4   :  { %p165_p0 = scmp.ne.s32.totalorder %s276_s0, %s164_s18  ;;  %p168_p1 = scmp.lt.u32.totalorder %s164_s18, %s276_s0 }
   0x6   :  { %p170_p2 = pnand %p168_p1, %p165_p0 }
   0x8   :  { %173 = shalt.err (!%p170_p2)
}
   0x9   :  { %s174_s23 = scalar_lea.vmem %s17_s13, 128  ;;  %p179_p4 = scmp.lt.s32.totalorder %s17_s13, %s17_s13 }
   0xa   :  { %p175_p3 = scmp.ne.s32.totalorder %s17_s13, %s174_s23  ;;  %p180_p5 = scmp.lt.s32.totalorder %s174_s23, %s174_s23 }
   0xc   :  { %p181_p6 = por %p180_p5, %p179_p4 }
   0xe   :  { %p182_p7 = pnand %p181_p6, %p175_p3 }
  0x10   :  { %185 = shalt.err (!%p182_p7)
}
  0x11   :  { %19 = dma.hbm_to_vmem [thread:$0]  %s276_s0, 128, %s17_s13, [#allocation3]  }
  0x12   :  { %s186_s28 = scalar_lea.hbm %s277_s1, 512 }
  0x13   :  { %p187_p8 = scmp.ne.s32.totalorder %s277_s1, %s186_s28  ;;  %p190_p9 = scmp.lt.u32.totalorder %s186_s28, %s277_s1 }
  0x15   :  { %p192_p10 = pnand %p190_p9, %p187_p8 }
  0x17   :  { %195 = shalt.err (!%p192_p10)
}
  0x18   :  { %s196_s6 = scalar_lea.vmem %s239_s15, 512  ;;  %p201_p12 = scmp.lt.s32.totalorder %s239_s15, %s239_s15 }
  0x19   :  { %p197_p11 = scmp.ne.s32.totalorder %s239_s15, %s196_s6  ;;  %p202_p13 = scmp.lt.s32.totalorder %s196_s6, %s196_s6 }
  0x1b   :  { %p203_p0 = por %p202_p13, %p201_p12 }
  0x1d   :  { %p204_p1 = pnand %p203_p0, %p197_p11 }
  0x1f   :  { %207 = shalt.err (!%p204_p1)
}
  0x20   :  { %s214_s0 = smov 128   ;;  %s215_s7 = smov 8  }
  0x21   :  { %31 = dma.hbm_to_vmem [thread:$0]  %s277_s1, 512, %s239_s15, [#allocation5], %s214_s0, %s214_s0, %s215_s7  }
  0x22   :  { %208 = dma.done.wait [#allocation3], 128  }
  0x23   :  { %209 = vsyncadd [#allocation3], 4294967168 }
  0x24   :  { %210 = dma.done.wait [#allocation5], 512  }
  0x25   :  { %211 = vsyncadd [#allocation5], 4294966784  ;;  %v216_v0 = vmov 0.0|0.0   ;;  %vm217_vm0 = vmmov 0   ;;  %v218_v1 = vmov 0.0   ;;  %v41_v2 = vld [vmem:[#allocation4] sm:$0xff] }
  0x26   :  { %151 = vmatprep.subr.bf16.mxu0 %v216_v0  ;;  %148 = vmatprep.mubr.msk.f32.mxu0 %vm217_vm0, %v218_v1  ;;  %v42_v3 = vld [vmem:[#allocation4 + $0x8] sm:$0xff]  ;;  %v43_v4 = vld [vmem:[#allocation4 + $0x10] sm:$0xff]  ;;  %v44_v6 = vld [vmem:[#allocation4 + $0x18] sm:$0xff]  ;;  %vm52_vm1 = vcmask 261120  }
  0x27   :  { %v152_v5 = vpack.c.bf16 %v42_v3, %v41_v2  ;;  %v155_v7 = vpack.c.bf16 %v44_v6, %v43_v4  ;;  %v40_v8 = vld [vmem:[#allocation2] sm:$0xff] }
  0x28   :  { %v133_v9 = vld [vmem:[%s278_s2] ss:$0 sm:$0xff] }
  0x29   :  { %153 = vmatpush3.bf16.msra.mxu0 %v152_v5 }
  0x2a   :  { %154 = vmatprep.subr.bf16.mxu0 %v216_v0 }
  0x2d   :  { %156 = vmatpush3.bf16.msra.mxu0 %v155_v7 }
  0x30   :  { %149 = vmatmul.mubr.msk.f32.vlgmr.msra.gmra.mrb[0].mxu0 %vm52_vm1, %v40_v8 }
 0x103   :  { %v122_v10 = vpop.f32.mrb[0].mxu0 }
 0x104   :  { %v123_v11 = vadd.f32 %v133_v9, %v122_v10  ;;  %v150_v12 = vpop.f32.mrb[1].mxu0 }
 0x106   :  { %126 = vst [vmem:[%s279_s3] sm:$0xff] %v123_v11 }
 0x107   :  { %131 = vsyncpa [#allocation3], 1 }
 0x108   :  { %132 = vsyncpa [#allocation5], 1 }

</bundles_post_ra>
